<compile_context>
chip_gen: v5e
topology: v5e:2x2
jax: 0.10.0
libtpu: 0.0.40
codegen_flags: <defaults>
</compile_context>

<pallas_src>
import functools

import jax
import jax.numpy as jnp
from jax.experimental import pallas as pl
from jax.experimental.pallas import tpu as pltpu


# ----------------------------------------------------------------------------
# Small helpers
# ----------------------------------------------------------------------------
def _round_up(n, m):
    return ((n + m - 1) // m) * m


def _pad2d(a, rows, cols):
    r, c = a.shape
    if r == rows and c == cols:
        return a
    return jnp.pad(a, ((0, rows - r), (0, cols - c)))


def _sublane(dtype):
    # packed sublane count: 8 for f32, 16 for bf16, 32 for int8/fp8
    return max(8, 32 // jnp.dtype(dtype).itemsize)


def _vmem_capacity():
    try:
        cap = int(getattr(pltpu.get_tpu_info(), "vmem_capacity_bytes", 0))
        if cap > 0:
            return cap
    except Exception:
        pass
    return 64 * 1024 * 1024  # conservative: v7x per-TC VMEM


def _choose_batch_tile(n, sublane, max_width_p):
    """Batch tile for the fused path: >=2 grid steps when possible (v7x 2 TC)."""
    if n <= sublane:
        tm = sublane
    elif n <= 256:
        tm = _round_up(pl.cdiv(n, 2), sublane)     # at least 2 grid steps
    elif n <= 1024:
        tm = 128
    else:
        tm = 256
    if max_width_p >= 2048:                        # keep live (tm, Hp) f32 small
        tm = min(tm, max(sublane, 64))
    return tm


def _choose_fallback_tm(n, sublane):
    if n >= 1024:
        return 512
    if n > 2 * sublane:
        return _round_up(pl.cdiv(n, 2), sublane)   # at least 2 grid steps
    return _round_up(max(n, 1), sublane)


def _pick_tile(dim, prefs):
    for p in prefs:
        if dim % p == 0:
            return p
    return dim


# ----------------------------------------------------------------------------
# One-time parameter preparation (hoisted out of the per-call forward).
# ----------------------------------------------------------------------------
def prepare_mlp(params, *, feature_pre=False, compute_dtype=jnp.float32):
    """Pads/casts/stacks weights once; returns everything the forward needs."""
    cd = jnp.dtype(compute_dtype)

    w1, b1 = params["first"]
    hidden = params["hidden"]
    wo, bo = params["out"]

    din = params["pre"][0].shape[0] if feature_pre else w1.shape[0]
    din_p = _round_up(din, 128)
    hp = _round_up(w1.shape[1], 128)
    dout = wo.shape[1]
    dout_p = _round_up(dout, 128)

    prepped = {
        "feature_pre": feature_pre, "compute_dtype": cd,
        "Din": din, "Din_p": din_p, "Hp": hp,
        "Dout": dout, "Dout_p": dout_p, "num_hidden": len(hidden),
    }

    if feature_pre:
        wp, bp = params["pre"]
        fp = _round_up(wp.shape[1], 128)
        prepped["Fp"] = fp
        prepped["pre"] = (_pad2d(wp, din_p, fp).astype(cd),
                          _pad2d(bp, 1, fp).astype(jnp.float32))
        first_in = fp
    else:
        prepped["Fp"] = 0
        first_in = din_p

    prepped["first"] = (_pad2d(w1, first_in, hp).astype(cd),
                        _pad2d(b1, 1, hp).astype(jnp.float32))
    if hidden:
        prepped["hidden"] = (
            jnp.stack([_pad2d(w, hp, hp) for (w, _) in hidden]).astype(cd),
            jnp.stack([_pad2d(b, 1, hp) for (_, b) in hidden]).astype(jnp.float32))
    else:
        prepped["hidden"] = None
    prepped["out"] = (_pad2d(wo, hp, dout_p).astype(cd),
                      _pad2d(bo, 1, dout_p).astype(jnp.float32))

    def nbytes(a):
        return int(a.size) * jnp.dtype(a.dtype).itemsize

    wb = 0
    if feature_pre:
        wb += nbytes(prepped["pre"][0]) + nbytes(prepped["pre"][1])
    wb += nbytes(prepped["first"][0]) + nbytes(prepped["first"][1])
    if prepped["hidden"] is not None:
        wb += nbytes(prepped["hidden"][0]) + nbytes(prepped["hidden"][1])
    wb += nbytes(prepped["out"][0]) + nbytes(prepped["out"][1])
    prepped["weight_bytes"] = wb
    return prepped


# ----------------------------------------------------------------------------
# Fused MLP kernel: one pallas_call for the whole network.
#   grid = (num_batch_tiles,), weights full-block resident in VMEM
#   (constant index_map => no re-DMA), activations never leave VMEM/vregs.
# ----------------------------------------------------------------------------
def _fused_mlp_kernel(*refs, has_pre, num_hidden):
    it = iter(refs)
    x_ref = next(it)
    if has_pre:
        wp_ref, bp_ref = next(it), next(it)
    w1_ref, b1_ref = next(it), next(it)
    if num_hidden > 0:
        wh_ref, bh_ref = next(it), next(it)          # stacked (L-2, H, H)
    wo_ref, bo_ref = next(it), next(it)
    o_ref = next(it)

    cd = w1_ref.dtype                                # MXU input dtype (f32/bf16)
    h = x_ref[...].astype(cd)
    if has_pre:
        h = jnp.dot(h, wp_ref[...], preferred_element_type=jnp.float32)
        h = (h + bp_ref[...]).astype(cd)
    h = jnp.dot(h, w1_ref[...], preferred_element_type=jnp.float32) + b1_ref[...]
    for i in range(num_hidden):                      # static unroll (small L)
        h = jnp.dot(h.astype(cd), wh_ref[i], preferred_element_type=jnp.float32)
        h = jnp.maximum(h + bh_ref[i], 0.0)
    y = jnp.dot(h.astype(cd), wo_ref[...], preferred_element_type=jnp.float32)
    o_ref[...] = (y + bo_ref[...]).astype(o_ref.dtype)


def _fused_forward(prepped, x, *, tm, vmem_limit):
    n, din = x.shape
    assert din == prepped["Din"]
    out_dtype = x.dtype
    cd = prepped["compute_dtype"]
    np_, din_p = _round_up(n, tm), prepped["Din_p"]
    dout, dout_p = prepped["Dout"], prepped["Dout_p"]
    num_hidden = prepped["num_hidden"]
    has_pre = prepped["feature_pre"]

    x_p = _pad2d(x, np_, din_p).astype(cd)

    def full_spec(shape):
        nd = len(shape)
        return pl.BlockSpec(shape, lambda i, _nd=nd: (0,) * _nd)

    inputs = [x_p]
    in_specs = [pl.BlockSpec((tm, din_p), lambda i: (i, 0))]
    flops = 0

    if has_pre:
        wp, bp = prepped["pre"]
        inputs += [wp, bp]
        in_specs += [full_spec(wp.shape), full_spec(bp.shape)]
        flops += 2 * np_ * wp.shape[0] * wp.shape[1]
    w1, b1 = prepped["first"]
    inputs += [w1, b1]
    in_specs += [full_spec(w1.shape), full_spec(b1.shape)]
    flops += 2 * np_ * w1.shape[0] * w1.shape[1]
    if num_hidden > 0:
        wh, bh = prepped["hidden"]
        inputs += [wh, bh]
        in_specs += [full_spec(wh.shape), full_spec(bh.shape)]
        flops += 2 * np_ * wh.shape[1] * wh.shape[2] * num_hidden
    wo, bo = prepped["out"]
    inputs += [wo, bo]
    in_specs += [full_spec(wo.shape), full_spec(bo.shape)]
    flops += 2 * np_ * wo.shape[0] * wo.shape[1]

    bytes_accessed = (prepped["weight_bytes"]
                      + int(x_p.size) * x_p.dtype.itemsize
                      + np_ * dout_p * jnp.dtype(out_dtype).itemsize)
    cost = pl.CostEstimate(flops=int(flops), transcendentals=0,
                           bytes_accessed=int(bytes_accessed))

    kernel = functools.partial(_fused_mlp_kernel, has_pre=has_pre,
                               num_hidden=num_hidden)
    y_p = pl.pallas_call(
        kernel,
        out_shape=jax.ShapeDtypeStruct((np_, dout_p), out_dtype),
        grid=(np_ // tm,),
        in_specs=in_specs,
        out_specs=pl.BlockSpec((tm, dout_p), lambda i: (i, 0)),
        compiler_params=pltpu.CompilerParams(
            dimension_semantics=("parallel",),       # megacore / 2-TC sharding
            vmem_limit_bytes=int(vmem_limit)),
        cost_estimate=cost,
    )(*inputs)
    return y_p[:n, :dout]


# ----------------------------------------------------------------------------
# Fallback: tiled / pipelined per-layer linear (+ optional fused ReLU).
# Used when the resident-weight set would not fit the VMEM budget.
# ----------------------------------------------------------------------------
def _tiled_linear_kernel(x_ref, w_ref, b_ref, o_ref, acc_ref, *, apply_relu):
    k = pl.program_id(2)

    @pl.when(k == 0)
    def _():
        acc_ref[...] = jnp.zeros_like(acc_ref)

    w = w_ref[0] if len(w_ref.shape) == 3 else w_ref[...]
    acc_ref[...] += jnp.dot(x_ref[...], w, preferred_element_type=jnp.float32)

    @pl.when(k == pl.num_programs(2) - 1)
    def _():
        b = b_ref[0] if len(b_ref.shape) == 3 else b_ref[...]
        y = acc_ref[...] + b
        if apply_relu:
            y = jnp.maximum(y, 0.0)
        o_ref[...] = y.astype(o_ref.dtype)


def _tiled_linear(x, w, b, *, apply_relu, out_dtype, tm, layer=0):
    n, k_dim = x.shape
    if w.ndim == 3:
        m = w.shape[2]
        w_spec = pl.BlockSpec((1, None, None), None)  # placeholder, set below
    else:
        m = w.shape[1]

    tn = _pick_tile(m, (256, 128))
    tk = _pick_tile(k_dim, (512, 256, 128))

    if w.ndim == 3:
        w_spec = pl.BlockSpec((1, tk, tn), lambda i, j, kk: (layer, kk, j))
        b_spec = pl.BlockSpec((1, 1, tn), lambda i, j, kk: (layer, 0, j))
    else:
        w_spec = pl.BlockSpec((tk, tn), lambda i, j, kk: (kk, j))
        b_spec = pl.BlockSpec((1, tn), lambda i, j, kk: (0, j))

    kernel = functools.partial(_tiled_linear_kernel, apply_relu=apply_relu)
    return pl.pallas_call(
        kernel,
        out_shape=jax.ShapeDtypeStruct((n, m), out_dtype),
        grid_spec=pltpu.PrefetchScalarGridSpec(
            num_scalar_prefetch=0,
            grid=(n // tm, m // tn, k_dim // tk),
            in_specs=[pl.BlockSpec((tm, tk), lambda i, j, kk: (i, kk)),
                      w_spec, b_spec],
            out_specs=pl.BlockSpec((tm, tn), lambda i, j, kk: (i, j)),
            scratch_shapes=[pltpu.VMEM((tm, tn), jnp.float32)]),
        compiler_params=pltpu.CompilerParams(
            dimension_semantics=("parallel", "parallel", "arbitrary")),
    )(x, w, b)


def _tiled_forward(prepped, x):
    n, _ = x.shape
    out_dtype = x.dtype
    cd = prepped["compute_dtype"]
    sublane = _sublane(cd)
    tm = min(512, _choose_fallback_tm(n, sublane))
    np_ = _round_up(n, tm)

    h = _pad2d(x, np_, prepped["Din_p"]).astype(cd)
    if prepped["feature_pre"]:
        w, b = prepped["pre"]
        h = _tiled_linear(h, w, b, apply_relu=False, out_dtype=cd, tm=tm)
    w, b = prepped["first"]
    h = _tiled_linear(h, w, b, apply_relu=False, out_dtype=cd, tm=tm)
    if prepped["hidden"] is not None:
        wh, bh = prepped["hidden"]
        for i in range(prepped["num_hidden"]):
            h = _tiled_linear(h, wh, bh, apply_relu=True, out_dtype=cd,
                              tm=tm, layer=i)
    w, b = prepped["out"]
    y = _tiled_linear(h, w, b, apply_relu=False, out_dtype=out_dtype, tm=tm)
    return y[:n, :prepped["Dout"]]


# ----------------------------------------------------------------------------
# Dispatcher: fused single kernel when weights (double-buffered) + I/O tiles
# + live activations fit ~70% of the physical VMEM of this TPU generation.
# ----------------------------------------------------------------------------
def mlp_forward(prepped, x, *, force_tiled=False):
    cd = prepped["compute_dtype"]
    n = x.shape[0]
    sublane = _sublane(cd)
    widths = [prepped["Din_p"], prepped["Hp"], prepped["Dout_p"], prepped["Fp"]]
    max_w = max(widths)
    tm = _choose_batch_tile(n, sublane, max_w)

    cap = _vmem_capacity()
    cd_size = jnp.dtype(cd).itemsize
    out_size = jnp.dtype(x.dtype).itemsize
    io_bytes = (2 * tm * prepped["Din_p"] * cd_size
                + 2 * tm * prepped["Dout_p"] * out_size)
    act_bytes = 4 * tm * max_w * 4                 # a few live f32 activations
    fused_footprint = 2 * prepped["weight_bytes"] + io_bytes + act_bytes

    if not force_tiled and fused_footprint <= int(0.70 * cap):
        return _fused_forward(prepped, x, tm=tm, vmem_limit=int(0.85 * cap))
    return _tiled_forward(prepped, x)


# ----------------------------------------------------------------------------
# Parameter init (mirrors torch.nn.Linear default: U(-1/sqrt(fan_in), +...))
# ----------------------------------------------------------------------------
def _init_linear(key, in_dim, out_dim, dtype=jnp.float32):
    kw, kb = jax.random.split(key)
    bound = 1.0 / jnp.sqrt(jnp.array(in_dim, dtype=jnp.float32))
    # Stored as (in_dim, out_dim) — i.e. torch weight (out, in) transposed.
    w = jax.random.uniform(kw, (in_dim, out_dim), dtype, -bound, bound)
    b = jax.random.uniform(kb, (1, out_dim), dtype, -bound, bound)
    return w, b


def init_mlp_params(key, input_dim, hidden_dim, output_dim,
                    feature_dim=None, feature_pre=False, layer_num=2):
    params = {}
    keys = jax.random.split(key, layer_num + 2)
    ki = 0
    if feature_pre:
        params["pre"] = _init_linear(keys[ki], input_dim, feature_dim); ki += 1
        params["first"] = _init_linear(keys[ki], feature_dim, hidden_dim); ki += 1
    else:
        params["first"] = _init_linear(keys[ki], input_dim, hidden_dim); ki += 1
    params["hidden"] = []
    for _ in range(layer_num - 2):
        params["hidden"].append(_init_linear(keys[ki], hidden_dim, hidden_dim))
        ki += 1
    params["out"] = _init_linear(keys[ki], hidden_dim, output_dim)
    return params


# ----------------------------------------------------------------------------
# Pure-JAX reference for correctness checks
# ----------------------------------------------------------------------------
def mlp_reference(params, x, *, feature_pre=False):
    if feature_pre:
        wp, bp = params["pre"]
        x = x @ wp + bp
    w1, b1 = params["first"]
    x = x @ w1 + b1
    for (wh, bh) in params["hidden"]:
        x = jnp.maximum(x @ wh + bh, 0.0)
    wo, bo = params["out"]
    return x @ wo + bo


if __name__ == "__main__":
    batch = 8
    input_dim, hidden_dim, output_dim = 16, 32, 8
    layer_num = 3          # -> exercises one hidden (ReLU) layer
    feature_dim = 24

    key = jax.random.PRNGKey(0)
    k_params, k_x, k_params_fp = jax.random.split(key, 3)

    params = init_mlp_params(k_params, input_dim, hidden_dim, output_dim,
                             feature_pre=False, layer_num=layer_num)
    x = jax.random.normal(k_x, (batch, input_dim), dtype=jnp.float32)
    y_ref = mlp_reference(params, x, feature_pre=False)

    # 1) Fused single-kernel path, f32 MXU inputs (prep hoisted to one call).
    prepped = prepare_mlp(params, feature_pre=False)
    y = jax.block_until_ready(mlp_forward(prepped, x))
    assert y.shape == (batch, output_dim)
    assert jnp.allclose(y, y_ref, atol=1e-5, rtol=1e-5), "fused f32 mismatch"

    # 2) Fused path with bf16 MXU inputs (f32 accumulate) — looser tolerance.
    prepped_bf16 = prepare_mlp(params, feature_pre=False,
                               compute_dtype=jnp.bfloat16)
    y_bf16 = jax.block_until_ready(mlp_forward(prepped_bf16, x))
    assert jnp.allclose(y_bf16, y_ref, atol=5e-2, rtol=5e-2), "fused bf16 mismatch"

    # 3) Force the tiled/pipelined per-layer fallback path.
    y_tiled = jax.block_until_ready(mlp_forward(prepped, x, force_tiled=True))
    assert jnp.allclose(y_tiled, y_ref, atol=1e-5, rtol=1e-5), "tiled mismatch"

    # 4) feature_pre=True variant (layer_num=2 -> no hidden layers).
    params_fp = init_mlp_params(k_params_fp, input_dim, hidden_dim, output_dim,
                                feature_dim=feature_dim, feature_pre=True,
                                layer_num=2)
    y_ref_fp = mlp_reference(params_fp, x, feature_pre=True)
    prepped_fp = prepare_mlp(params_fp, feature_pre=True)
    y_fp = jax.block_until_ready(mlp_forward(prepped_fp, x))
    assert jnp.allclose(y_fp, y_ref_fp, atol=1e-5, rtol=1e-5), "pre mismatch"

    print("KERNEL_OK")
</pallas_src>

<mosaic_0001>
module attributes {stable_mosaic.version = 11 : i64} {
  func.func @_fused_mlp_kernel(%arg0: i32, %arg1: memref<8x128xf32, #tpu.memory_space<vmem>>, %arg2: memref<128x128xf32, #tpu.memory_space<vmem>>, %arg3: memref<1x128xf32, #tpu.memory_space<vmem>>, %arg4: memref<1x128x128xf32, #tpu.memory_space<vmem>>, %arg5: memref<1x1x128xf32, #tpu.memory_space<vmem>>, %arg6: memref<128x128xf32, #tpu.memory_space<vmem>>, %arg7: memref<1x128xf32, #tpu.memory_space<vmem>>, %arg8: memref<8x128xf32, #tpu.memory_space<vmem>>) attributes {dimension_semantics = [#tpu.dimension_semantics<parallel>], iteration_bounds = array<i64: 1>, scalar_prefetch = 0 : i64, scratch_operands = 0 : i64, tpu.core_type = #tpu.core_type<tc>, window_params = [{transform_indices = @transform_0, window_bounds = array<i64: 8, 128>}, {pipeline_mode = #tpu.pipeline_mode<synchronous>, transform_indices = @transform_1, window_bounds = array<i64: 128, 128>}, {pipeline_mode = #tpu.pipeline_mode<synchronous>, transform_indices = @transform_2, window_bounds = array<i64: 1, 128>}, {pipeline_mode = #tpu.pipeline_mode<synchronous>, transform_indices = @transform_3, window_bounds = array<i64: 1, 128, 128>}, {pipeline_mode = #tpu.pipeline_mode<synchronous>, transform_indices = @transform_4, window_bounds = array<i64: 1, 1, 128>}, {pipeline_mode = #tpu.pipeline_mode<synchronous>, transform_indices = @transform_5, window_bounds = array<i64: 128, 128>}, {pipeline_mode = #tpu.pipeline_mode<synchronous>, transform_indices = @transform_6, window_bounds = array<i64: 1, 128>}, {transform_indices = @transform_7, window_bounds = array<i64: 8, 128>}]} {
    %c0 = arith.constant 0 : index
    %c0_0 = arith.constant 0 : index
    %0 = vector.load %arg1[%c0, %c0_0] : memref<8x128xf32, #tpu.memory_space<vmem>>, vector<8x128xf32>
    %c0_1 = arith.constant 0 : index
    %c0_2 = arith.constant 0 : index
    %1 = vector.load %arg2[%c0_1, %c0_2] : memref<128x128xf32, #tpu.memory_space<vmem>>, vector<128x128xf32>
    %cst = arith.constant dense<0.000000e+00> : vector<8x128xf32>
    %2 = tpu.matmul %0, %1, %cst {dimension_numbers = #tpu.dot_dimension_numbers<[1], [0], [0], [1], [0, 0, 1, 1], [], []>} : vector<8x128xf32>, vector<128x128xf32>, vector<8x128xf32> -> vector<8x128xf32>
    %c0_3 = arith.constant 0 : index
    %c0_4 = arith.constant 0 : index
    %3 = vector.load %arg3[%c0_3, %c0_4] : memref<1x128xf32, #tpu.memory_space<vmem>>, vector<1x128xf32>
    %4 = vector.broadcast %3 : vector<1x128xf32> to vector<8x128xf32>
    %5 = arith.addf %2, %4 : vector<8x128xf32>
    %c0_5 = arith.constant 0 : index
    %c0_6 = arith.constant 0 : index
    %c0_7 = arith.constant 0 : index
    %6 = vector.load %arg4[%c0_5, %c0_6, %c0_7] : memref<1x128x128xf32, #tpu.memory_space<vmem>>, vector<1x128x128xf32>
    %7 = vector.shape_cast %6 : vector<1x128x128xf32> to vector<128x128xf32>
    %cst_8 = arith.constant dense<0.000000e+00> : vector<8x128xf32>
    %8 = tpu.matmul %5, %7, %cst_8 {dimension_numbers = #tpu.dot_dimension_numbers<[1], [0], [0], [1], [0, 0, 1, 1], [], []>} : vector<8x128xf32>, vector<128x128xf32>, vector<8x128xf32> -> vector<8x128xf32>
    %c0_9 = arith.constant 0 : index
    %c0_10 = arith.constant 0 : index
    %c0_11 = arith.constant 0 : index
    %9 = vector.load %arg5[%c0_9, %c0_10, %c0_11] : memref<1x1x128xf32, #tpu.memory_space<vmem>>, vector<1x1x128xf32>
    %10 = vector.shape_cast %9 : vector<1x1x128xf32> to vector<1x128xf32>
    %11 = vector.broadcast %10 : vector<1x128xf32> to vector<8x128xf32>
    %12 = arith.addf %8, %11 : vector<8x128xf32>
    %cst_12 = arith.constant 0.000000e+00 : f32
    %13 = vector.broadcast %cst_12 : f32 to vector<8x128xf32>
    %14 = arith.maximumf %12, %13 : vector<8x128xf32>
    %c0_13 = arith.constant 0 : index
    %c0_14 = arith.constant 0 : index
    %15 = vector.load %arg6[%c0_13, %c0_14] : memref<128x128xf32, #tpu.memory_space<vmem>>, vector<128x128xf32>
    %cst_15 = arith.constant dense<0.000000e+00> : vector<8x128xf32>
    %16 = tpu.matmul %14, %15, %cst_15 {dimension_numbers = #tpu.dot_dimension_numbers<[1], [0], [0], [1], [0, 0, 1, 1], [], []>} : vector<8x128xf32>, vector<128x128xf32>, vector<8x128xf32> -> vector<8x128xf32>
    %c0_16 = arith.constant 0 : index
    %c0_17 = arith.constant 0 : index
    %17 = vector.load %arg7[%c0_16, %c0_17] : memref<1x128xf32, #tpu.memory_space<vmem>>, vector<1x128xf32>
    %18 = vector.broadcast %17 : vector<1x128xf32> to vector<8x128xf32>
    %19 = arith.addf %16, %18 : vector<8x128xf32>
    %c0_18 = arith.constant 0 : index
    %c0_19 = arith.constant 0 : index
    %20 = vector.load %arg8[%c0_18, %c0_19] : memref<8x128xf32, #tpu.memory_space<vmem>>, vector<8x128xf32>
    tpu.vector_store %arg8[%c0_18, %c0_19], %19 {strides = array<i32>} : memref<8x128xf32, #tpu.memory_space<vmem>>, vector<8x128xf32>,
    return
  }
  func.func @transform_0(%arg0: i32) -> (i32, i32) {
    %c0_i32 = arith.constant 0 : i32
    %c0_i32_0 = arith.constant 0 : i32
    return %arg0, %c0_i32 : i32, i32
  }
  func.func @transform_1(%arg0: i32) -> (i32, i32) {
    %c0_i32 = arith.constant 0 : i32
    %c0_i32_0 = arith.constant 0 : i32
    %c0_i32_1 = arith.constant 0 : i32
    return %c0_i32, %c0_i32_0 : i32, i32
  }
  func.func @transform_2(%arg0: i32) -> (i32, i32) {
    %c0_i32 = arith.constant 0 : i32
    %c0_i32_0 = arith.constant 0 : i32
    %c0_i32_1 = arith.constant 0 : i32
    return %c0_i32, %c0_i32_0 : i32, i32
  }
  func.func @transform_3(%arg0: i32) -> (i32, i32, i32) {
    %c0_i32 = arith.constant 0 : i32
    %c0_i32_0 = arith.constant 0 : i32
    %c0_i32_1 = arith.constant 0 : i32
    %c0_i32_2 = arith.constant 0 : i32
    return %c0_i32, %c0_i32_0, %c0_i32_1 : i32, i32, i32
  }
  func.func @transform_4(%arg0: i32) -> (i32, i32, i32) {
    %c0_i32 = arith.constant 0 : i32
    %c0_i32_0 = arith.constant 0 : i32
    %c0_i32_1 = arith.constant 0 : i32
    %c0_i32_2 = arith.constant 0 : i32
    return %c0_i32, %c0_i32_0, %c0_i32_1 : i32, i32, i32
  }
  func.func @transform_5(%arg0: i32) -> (i32, i32) {
    %c0_i32 = arith.constant 0 : i32
    %c0_i32_0 = arith.constant 0 : i32
    %c0_i32_1 = arith.constant 0 : i32
    return %c0_i32, %c0_i32_0 : i32, i32
  }
  func.func @transform_6(%arg0: i32) -> (i32, i32) {
    %c0_i32 = arith.constant 0 : i32
    %c0_i32_0 = arith.constant 0 : i32
    %c0_i32_1 = arith.constant 0 : i32
    return %c0_i32, %c0_i32_0 : i32, i32
  }
  func.func @transform_7(%arg0: i32) -> (i32, i32) {
    %c0_i32 = arith.constant 0 : i32
    %c0_i32_0 = arith.constant 0 : i32
    return %arg0, %c0_i32 : i32, i32
  }
}

</mosaic_0001>

<bundles_post_ra>
// kernel: tpu_custom_call.1
= control target key start
LH: loop header
LB: loop body
LE: loop exit
PB: predicated region body
PF: predicated region fallthrough
CT: control target
= control target key end

     0   :  { %12 = vsyncpa [#allocation3], 0  ;;  %s439_s0 = inlined_call_operand.hbm [shape: f32[8,128], index: 0, kind: input, shape index: {}]   ;;  %s440_s1 = inlined_call_operand.hbm [shape: f32[128,128], index: 1, kind: input, shape index: {}]   ;;  %s441_s2 = inlined_call_operand.vmem [shape: f32[1,128], index: 2, kind: input, shape index: {}]   ;;  %s442_s3 = inlined_call_operand.hbm [shape: f32[1,128,128], index: 3, kind: input, shape index: {}]   ;;  %s443_s4 = inlined_call_operand.vmem [shape: f32[1,1,128], index: 4, kind: input, shape index: {}]   ;;  %s444_s5 = inlined_call_operand.hbm [shape: f32[128,128], index: 5, kind: input, shape index: {}]   ;;  %s445_s6 = inlined_call_operand.vmem [shape: f32[1,128], index: 6, kind: input, shape index: {}]   ;;  %s446_s7 = inlined_call_operand.hbm [shape: f32[8,128], index: 7, kind: output, shape index: {}]  }
   0x1   :  { %13 = vsyncpa [#allocation6], 0 }
   0x2   :  { %14 = vsyncpa [#allocation9], 0  ;;  %s31_s26 = sshll.u32 %s440_s1, 4  ;;  %s32_s26 = int_to_ptr.hbm [resolvable:$true] %s31_s26 }
   0x3   :  { %15 = vsyncpa [#allocation4], 0  ;;  %s368_s27 = smov [#allocation5]   ;;  %s21_s8 = sshll.u32 %s439_s0, 4  ;;  %s22_s8 = int_to_ptr.hbm [resolvable:$true] %s21_s8 }
   0x4   :  { %s33_s28 = sshll.u32 %s368_s27, 4  ;;  %s369_s9 = smov 128   ;;  %s34_s28 = int_to_ptr.vmem [resolvable:$true] %s33_s28 }
   0x5   :  { %s370_s10 = smov 8   ;;  %s371_s11 = smov [#allocation2]  }
   0x6   :  { %39 = dma.hbm_to_vmem [thread:$0]  %s32_s26, 2048, %s34_s28, [#allocation6], %s369_s9, %s369_s9, %s370_s10  }
   0x7   :  { %s23_s12 = sshll.u32 %s371_s11, 4  ;;  %s46_s15 = sshll.u32 %s442_s3, 4  ;;  %s24_s12 = int_to_ptr.vmem [resolvable:$true] %s23_s12  ;;  %s47_s15 = int_to_ptr.hbm [resolvable:$true] %s46_s15 }
   0x8   :  { %26 = dma.hbm_to_vmem [thread:$0]  %s22_s8, 128, %s24_s12, [#allocation3]  }
   0x9   :  { %s61_s17 = sshll.u32 %s444_s5, 4  ;;  %s372_s18 = smov [#allocation7]   ;;  %s62_s17 = int_to_ptr.hbm [resolvable:$true] %s61_s17 }
   0xa   :  { %s48_s19 = sshll.u32 %s372_s18, 4  ;;  %s373_s0 = smov [#allocation8]   ;;  %s49_s19 = int_to_ptr.vmem [resolvable:$true] %s48_s19 }
   0xb   :  { %54 = dma.hbm_to_vmem [thread:$0]  %s47_s15, 2048, %s49_s19, [#allocation6], %s369_s9, %s369_s9, %s370_s10  }
   0xc   :  { %s63_s20 = sshll.u32 %s373_s0, 4  ;;  %s64_s20 = int_to_ptr.vmem [resolvable:$true] %s63_s20 }
   0xd   :  { %69 = dma.hbm_to_vmem [thread:$0]  %s62_s17, 2048, %s64_s20, [#allocation9], %s369_s9, %s369_s9, %s370_s10  }
   0xe   :  { %360 = dma.done.wait [#allocation3], 128  }
   0xf   :  { %361 = vsyncadd [#allocation3], 4294967168 }
  0x10   :  { %362 = dma.done.wait [#allocation6], 4096  }
  0x11   :  { %363 = vsyncadd [#allocation6], 4294963200 }
  0x12   :  { %364 = dma.done.wait [#allocation9], 2048  }
  0x13   :  { %365 = vsyncadd [#allocation9], 4294965248  ;;  %v104_v0 = vld [vmem:[#allocation5 + $0x78] sm:$0xff]  ;;  %v103_v1 = vld [vmem:[#allocation5 + $0x70] sm:$0xff]  ;;  %s218_s28 = sshll.u32 %s446_s7, 4  ;;  %s219_s28 = int_to_ptr.hbm [resolvable:$true] %s218_s28 }
  0x14   :  { %109 = vmatpush.msra.mxu0 %v104_v0  ;;  %v102_v2 = vld [vmem:[#allocation5 + $0x68] sm:$0xff]  ;;  %v101_v3 = vld [vmem:[#allocation5 + $0x60] sm:$0xff]  ;;  %v144_v4 = vld [vmem:[#allocation7 + $0x78] sm:$0xff] }
  0x15   :  { %v100_v5 = vld [vmem:[#allocation5 + $0x58] sm:$0xff]  ;;  %149 = vmatpush.msra.mxu1 %v144_v4  ;;  %v143_v6 = vld [vmem:[#allocation7 + $0x70] sm:$0xff]  ;;  %v142_v7 = vld [vmem:[#allocation7 + $0x68] sm:$0xff] }
  0x16   :  { %110 = vmatpush.msra.mxu0 %v103_v1  ;;  %v99_v8 = vld [vmem:[#allocation5 + $0x50] sm:$0xff]  ;;  %v141_v9 = vld [vmem:[#allocation7 + $0x60] sm:$0xff]  ;;  %v98_v10 = vld [vmem:[#allocation5 + $0x48] sm:$0xff] }
  0x17   :  { %150 = vmatpush.msra.mxu1 %v143_v6  ;;  %v140_v11 = vld [vmem:[#allocation7 + $0x58] sm:$0xff]  ;;  %v97_v12 = vld [vmem:[#allocation5 + $0x40] sm:$0xff]  ;;  %v139_v13 = vld [vmem:[#allocation7 + $0x50] sm:$0xff] }
  0x18   :  { %111 = vmatpush.msra.mxu0 %v102_v2  ;;  %v96_v14 = vld [vmem:[#allocation5 + $0x38] sm:$0xff]  ;;  %v138_v15 = vld [vmem:[#allocation7 + $0x48] sm:$0xff]  ;;  %v95_v16 = vld [vmem:[#allocation5 + $0x30] sm:$0xff] }
  0x19   :  { %151 = vmatpush.msra.mxu1 %v142_v7  ;;  %v137_v17 = vld [vmem:[#allocation7 + $0x40] sm:$0xff]  ;;  %v94_v18 = vld [vmem:[#allocation5 + $0x28] sm:$0xff]  ;;  %v136_v19 = vld [vmem:[#allocation7 + $0x38] sm:$0xff] }
  0x1a   :  { %112 = vmatpush.msra.mxu0 %v101_v3  ;;  %v93_v20 = vld [vmem:[#allocation5 + $0x20] sm:$0xff]  ;;  %v135_v21 = vld [vmem:[#allocation7 + $0x30] sm:$0xff]  ;;  %v92_v22 = vld [vmem:[#allocation5 + $0x18] sm:$0xff] }
  0x1b   :  { %152 = vmatpush.msra.mxu1 %v141_v9  ;;  %v134_v23 = vld [vmem:[#allocation7 + $0x28] sm:$0xff]  ;;  %v91_v24 = vld [vmem:[#allocation5 + $0x10] sm:$0xff]  ;;  %v133_v25 = vld [vmem:[#allocation7 + $0x20] sm:$0xff] }
  0x1c   :  { %113 = vmatpush.msra.mxu0 %v100_v5  ;;  %v90_v26 = vld [vmem:[#allocation5 + $0x8] sm:$0xff]  ;;  %v132_v27 = vld [vmem:[#allocation7 + $0x18] sm:$0xff]  ;;  %v89_v28 = vld [vmem:[#allocation5] sm:$0xff] }
  0x1d   :  { %153 = vmatpush.msra.mxu1 %v140_v11  ;;  %v88_v29 = vld [vmem:[#allocation2] sm:$0xff]  ;;  %v131_v30 = vld [vmem:[#allocation7 + $0x10] sm:$0xff]  ;;  %v130_v31 = vld [vmem:[#allocation7 + $0x8] sm:$0xff] }
  0x1e   :  { %114 = vmatpush.msra.mxu0 %v99_v8  ;;  %v129_v32 = vld [vmem:[#allocation7] sm:$0xff]  ;;  %v185_v33 = vld [vmem:[#allocation8 + $0x78] sm:$0xff]  ;;  %v184_v34 = vld [vmem:[#allocation8 + $0x70] sm:$0xff] }
  0x1f   :  { %154 = vmatpush.msra.mxu1 %v139_v13  ;;  %190 = vmatpush.msra.mxu2 %v185_v33  ;;  %v183_v35 = vld [vmem:[#allocation8 + $0x68] sm:$0xff]  ;;  %v182_v36 = vld [vmem:[#allocation8 + $0x60] sm:$0xff]  ;;  %v181_v37 = vld [vmem:[#allocation8 + $0x58] sm:$0xff] }
  0x20   :  { %115 = vmatpush.msra.mxu0 %v98_v10  ;;  %v180_v38 = vld [vmem:[#allocation8 + $0x50] sm:$0xff]  ;;  %v179_v39 = vld [vmem:[#allocation8 + $0x48] sm:$0xff]  ;;  %v178_v40 = vld [vmem:[#allocation8 + $0x40] sm:$0xff] }
  0x21   :  { %155 = vmatpush.msra.mxu1 %v138_v15  ;;  %191 = vmatpush.msra.mxu2 %v184_v34  ;;  %v177_v41 = vld [vmem:[#allocation8 + $0x38] sm:$0xff]  ;;  %v176_v42 = vld [vmem:[#allocation8 + $0x30] sm:$0xff]  ;;  %v175_v43 = vld [vmem:[#allocation8 + $0x28] sm:$0xff] }
  0x22   :  { %116 = vmatpush.msra.mxu0 %v97_v12  ;;  %v174_v44 = vld [vmem:[#allocation8 + $0x20] sm:$0xff]  ;;  %v173_v45 = vld [vmem:[#allocation8 + $0x18] sm:$0xff]  ;;  %v172_v49 = vld [vmem:[#allocation8 + $0x10] sm:$0xff] }
  0x23   :  { %156 = vmatpush.msra.mxu1 %v137_v17  ;;  %192 = vmatpush.msra.mxu2 %v183_v35  ;;  %v237_v46 = vld [vmem:[%s441_s2] ss:$0 sm:$0xff]  ;;  %v171_v50 = vld [vmem:[#allocation8 + $0x8] sm:$0xff]  ;;  %v170_v51 = vld [vmem:[#allocation8] sm:$0xff]  ;;  %s374_s2 = smov [#allocation10]  }
  0x24   :  { %117 = vmatpush.msra.mxu0 %v96_v14  ;;  %v238_v52 = vld [vmem:[%s443_s4] ss:$0 sm:$0xff]  ;;  %s216_s25 = sshll.u32 %s374_s2, 4  ;;  %s217_s25 = int_to_ptr.vmem [resolvable:$true] %s216_s25 }
  0x25   :  { %157 = vmatpush.msra.mxu1 %v136_v19  ;;  %193 = vmatpush.msra.mxu2 %v182_v36  ;;  %v239_v56 = vld [vmem:[%s445_s6] ss:$0 sm:$0xff] }
  0x26   :  { %118 = vmatpush.msra.mxu0 %v95_v16 }
  0x27   :  { %158 = vmatpush.msra.mxu1 %v135_v21  ;;  %194 = vmatpush.msra.mxu2 %v181_v37 }
  0x28   :  { %119 = vmatpush.msra.mxu0 %v94_v18 }
  0x29   :  { %159 = vmatpush.msra.mxu1 %v134_v23  ;;  %195 = vmatpush.msra.mxu2 %v180_v38 }
  0x2a   :  { %120 = vmatpush.msra.mxu0 %v93_v20 }
  0x2b   :  { %160 = vmatpush.msra.mxu1 %v133_v25  ;;  %196 = vmatpush.msra.mxu2 %v179_v39 }
  0x2c   :  { %121 = vmatpush.msra.mxu0 %v92_v22 }
  0x2d   :  { %161 = vmatpush.msra.mxu1 %v132_v27  ;;  %197 = vmatpush.msra.mxu2 %v178_v40 }
  0x2e   :  { %122 = vmatpush.msra.mxu0 %v91_v24 }
  0x2f   :  { %162 = vmatpush.msra.mxu1 %v131_v30  ;;  %198 = vmatpush.msra.mxu2 %v177_v41 }
  0x30   :  { %123 = vmatpush.msra.mxu0 %v90_v26 }
  0x31   :  { %163 = vmatpush.msra.mxu1 %v130_v31  ;;  %199 = vmatpush.msra.mxu2 %v176_v42 }
  0x32   :  { %124 = vmatpush.msra.mxu0 %v89_v28 }
  0x33   :  { %125 = vmatmul.f32.vlgmr.msra.gmra.mxu0 %v88_v29  ;;  %164 = vmatpush.msra.mxu1 %v129_v32 }
  0x34   :  { %200 = vmatpush.msra.mxu2 %v175_v43 }
  0x36   :  { %201 = vmatpush.msra.mxu2 %v174_v44 }
  0x38   :  { %202 = vmatpush.msra.mxu2 %v173_v45 }
  0x3a   :  { %203 = vmatpush.msra.mxu2 %v172_v49 }
  0x3c   :  { %204 = vmatpush.msra.mxu2 %v171_v50 }
  0x3e   :  { %205 = vmatpush.msra.mxu2 %v170_v51 }
  0xb0   :  { %v126_v47 = vpop.f32.mrf.mxu0 }
  0xb1   :  { %v127_v48 = vadd.f32 %v237_v46, %v126_v47 }
  0xb3   :  { %165 = vmatmul.f32.vlgmr.msra.gmra.mxu1 %v127_v48 }
 0x130   :  { %v166_v53 = vpop.f32.mrf.mxu1 }
 0x131   :  { %v167_v54 = vadd.f32 %v238_v52, %v166_v53 }
 0x133   :  { %v169_v55 = vmax.f32 %v167_v54, 0.0 }
 0x135   :  { %206 = vmatmul.f32.vlgmr.msra.gmra.mxu2 %v169_v55 }
 0x1b8   :  { %v207_v57 = vpop.f32.mrf.mxu2 }
 0x1b9   :  { %v208_v58 = vadd.f32 %v239_v56, %v207_v57 }
 0x1bb   :  { %210 = vst [vmem:[#allocation10] sm:$0xff] %v208_v58 }
 0x1bc   :  { %221 = dma.vmem_to_hbm [thread:$0]  %s217_s25, 128, %s219_s28, [#allocation4]  }
 0x1bd   :  { %366 = dma.done.wait [#allocation4], 128  }
 0x1be   :  { %367 = vsyncadd [#allocation4], 4294967168 }
 0x1bf   :  { %226 = vsyncpa [#allocation3], 1 }
 0x1c0   :  { %227 = vsyncpa [#allocation6], 1 }
 0x1c1   :  { %228 = vsyncpa [#allocation9], 1 }
 0x1c2   :  { %229 = vsyncpa [#allocation4], 1 }

</bundles_post_ra>
